<compile_context>
chip_gen: v5e
topology: v5e:2x2
jax: 0.10.0
libtpu: 0.0.40
codegen_flags: <defaults>
</compile_context>

<pallas_src>
import jax
import jax.numpy as jnp
from jax.experimental import pallas as pl
from jax.experimental.pallas import tpu as pltpu


def _gin_kernel(x_ref, scale_ref, shift_ref, out_ref):
    # x_ref/scale_ref/shift_ref/out_ref: (Rt, Kt) blocks; pure FMA on the VPU.
    out_ref[...] = (x_ref[...] * scale_ref[...] + shift_ref[...]).astype(out_ref.dtype)


def _round_up(n, m):
    return ((n + m - 1) // m) * m


def _largest_aligned_divisor(n, align, cap):
    """Largest multiple of `align` that divides `n` and is <= cap (0 if none)."""
    best = 0
    d = align
    limit = min(n, cap)
    while d <= limit:
        if n % d == 0:
            best = d
        d += align
    return best


def _choose_tiles(B, C, K, itemsize, block_bytes):
    """Pick (row_tile, lane_tile, padded_K) for the (B*C, K) view of x."""
    R = B * C
    Kp0 = _round_up(K, 128)
    target_elems = max(8 * 128, block_bytes // itemsize)

    # Row-tile candidates: multiples of C that divide R and are either
    # 8-aligned (clean sublane tiles) or the full row extent.
    cands = sorted({C * bt for bt in range(1, B + 1)
                    if B % bt == 0 and ((C * bt) % 8 == 0 or C * bt == R)})
    # Soft cap on rows so the lane tile can stay wide (review: wide lane tiles).
    row_cap = max(cands[0], min(256, max(8, target_elems // 128)))
    rt = max([c for c in cands if c <= row_cap], default=cands[0])

    # Lane tile: fill the remaining byte budget, multiple of 128, <= padded K.
    kt = max(128, (target_elems // rt) // 128 * 128)
    kt = min(kt, Kp0)
    # Prefer a lane tile that divides the 128-padded width (no extra padding);
    # otherwise pad K further up to a multiple of kt.
    kt_div = _largest_aligned_divisor(Kp0, 128, kt)
    if kt_div >= max(128, kt // 2):
        kt, Kp = kt_div, Kp0
    else:
        Kp = _round_up(K, kt)
    return rt, kt, Kp


def group_instance_norm(x, log_scale, shift, group_len, *, block_bytes=1 << 20):
    """x: (B, C, K); log_scale, shift: (C, group_len).

    Returns (out, log_det) matching GroupInstanceNorm.forward (features=C,
    initialized / eval mode).
    """
    if group_len <= 0:
        raise TypeError('Number of features must be a positive integer.')
    if x.ndim != 3:
        raise ValueError('Expecting inputs to be a 3D tensor.')
    B, C, K = x.shape
    G = group_len
    if K % G != 0:
        raise ValueError('Expecting K_sample to be divisible by group_len.')
    n_groups = K // G
    R = B * C
    itemsize = jnp.dtype(x.dtype).itemsize

    rt, kt, Kp = _choose_tiles(B, C, K, itemsize, block_bytes)

    # ---- Parameter prep (tiny (C, G) arrays, done once in XLA) ----
    # exp(clamp(log_scale, max=1e10)) tiled along K so position k picks up
    # param[:, k % G] (same as unfold + view/repeat in PyTorch).
    scale_ck = jnp.tile(jnp.exp(jnp.minimum(log_scale, 1e10)).astype(x.dtype),
                        (1, n_groups))                                   # (C, K)
    shift_ck = jnp.tile(shift.astype(x.dtype), (1, n_groups))            # (C, K)
    log_det = jnp.sum(log_scale)

    if Kp > K:
        scale_ck = jnp.pad(scale_ck, ((0, 0), (0, Kp - K)), constant_values=1.0)
        shift_ck = jnp.pad(shift_ck, ((0, 0), (0, Kp - K)), constant_values=0.0)
    # Rows of the folded x repeat channels with period C, and rt % C == 0, so a
    # single (rt, Kp) param slab is valid for every row block.
    scale_rt = jnp.tile(scale_ck, (rt // C, 1))                          # (rt, Kp)
    shift_rt = jnp.tile(shift_ck, (rt // C, 1))                          # (rt, Kp)

    # ---- x: fold C into rows, pad lanes ----
    x2 = x.reshape(R, K)
    if Kp > K:
        x2 = jnp.pad(x2, ((0, 0), (0, Kp - K)))

    grid_r = R // rt
    grid_k = Kp // kt

    if grid_k >= 2:
        # Lane axis outer: params (block index (0, lane)) are re-fetched only
        # when the lane block changes (grid_k times total), and the leading
        # parallel axis has extent >= 2 for megacore sharding on v7x.
        grid = (grid_k, grid_r)
        x_map = lambda j, i: (i, j)
        p_map = lambda j, i: (0, j)
    else:
        # Single lane block: params are constant -> fetched once; rows lead.
        grid = (grid_r, grid_k)
        x_map = lambda i, j: (i, j)
        p_map = lambda i, j: (0, j)

    cost = pl.CostEstimate(
        flops=2 * R * Kp,
        bytes_accessed=(2 * R * Kp + 2 * rt * Kp) * itemsize,
        transcendentals=0)

    out2 = pl.pallas_call(
        _gin_kernel,
        out_shape=jax.ShapeDtypeStruct((R, Kp), x.dtype),
        grid_spec=pltpu.PrefetchScalarGridSpec(
            num_scalar_prefetch=0,
            grid=grid,
            in_specs=[
                pl.BlockSpec((rt, kt), x_map),   # x slab
                pl.BlockSpec((rt, kt), p_map),   # scale slab (rarely re-DMA'd)
                pl.BlockSpec((rt, kt), p_map),   # shift slab (rarely re-DMA'd)
            ],
            out_specs=pl.BlockSpec((rt, kt), x_map),
        ),
        compiler_params=pltpu.CompilerParams(
            dimension_semantics=("parallel", "parallel"),
            vmem_limit_bytes=32 * 1024 * 1024),
        cost_estimate=cost,
    )(x2, scale_rt, shift_rt)

    out = out2[:, :K].reshape(B, C, K)
    return out, log_det


def group_instance_norm_ref(x, log_scale, shift, group_len):
    """Pure-JAX reference mirroring the PyTorch forward (features=C branch)."""
    B, C, K = x.shape
    n_groups = K // group_len
    scale = jnp.exp(jnp.minimum(log_scale, 1e10))              # (C, G)
    scale_full = jnp.tile(scale, (1, n_groups))                # (C, K)
    shift_full = jnp.tile(shift, (1, n_groups))                # (C, K)
    out = scale_full[None] * x + shift_full[None]
    log_det = jnp.sum(log_scale)                               # as in the module
    return out, log_det


def _check(name, x, log_scale, shift, G, **kw):
    out, log_det = group_instance_norm(x, log_scale, shift, G, **kw)
    out = jax.block_until_ready(out)
    log_det = jax.block_until_ready(log_det)
    out_ref, log_det_ref = group_instance_norm_ref(x, log_scale, shift, G)
    assert jnp.allclose(out, out_ref, rtol=1e-5, atol=1e-5), f"output mismatch ({name})"
    assert jnp.allclose(log_det, log_det_ref, rtol=1e-5, atol=1e-5), f"log_det mismatch ({name})"


if __name__ == "__main__":
    key = jax.random.PRNGKey(0)
    k1, k2, k3 = jax.random.split(key, 3)

    # Case 1: tiny module-like shape (B, C, K); single (8, 128) block after
    # row-folding and lane padding (K=40 -> 128).
    B, C, K, G = 2, 4, 40, 5
    x = jax.random.normal(k1, (B, C, K), dtype=jnp.float32)
    log_scale = (0.01 * jnp.arange(C * G, dtype=jnp.float32)).reshape(C, G)
    shift = (0.1 * jnp.arange(C * G, dtype=jnp.float32) - 1.0).reshape(C, G)
    _check("case 1", x, log_scale, shift, G)

    # Case 2: non-128-multiple K (650 -> padded to 768) with C not a multiple
    # of 8 (row tile falls back to the full 24 folded rows).
    B2, C2, K2, G2 = 2, 12, 650, 13
    x2 = jax.random.normal(k2, (B2, C2, K2), dtype=jnp.float32)
    ls2 = (0.005 * jnp.arange(C2 * G2, dtype=jnp.float32)).reshape(C2, G2) - 0.05
    sh2 = (0.02 * jnp.arange(C2 * G2, dtype=jnp.float32)).reshape(C2, G2)
    _check("case 2", x2, ls2, sh2, G2)

    # Case 3: multi-block grid (lane axis leads, rows inner) via a small byte
    # budget; exercises param residency across the inner row loop.
    B3, C3, K3, G3 = 32, 8, 1280, 5
    x3 = jax.random.normal(k3, (B3, C3, K3), dtype=jnp.float32)
    ls3 = (0.003 * jnp.arange(C3 * G3, dtype=jnp.float32)).reshape(C3, G3) - 0.1
    sh3 = (0.01 * jnp.arange(C3 * G3, dtype=jnp.float32)).reshape(C3, G3) + 0.5
    _check("case 3", x3, ls3, sh3, G3, block_bytes=64 * 1024)

    # TODO(synk): the training-time data-dependent `_initialize`, the
    # `features=None` parameter variant, and `reverse()` are not implemented;
    # only the initialized eval-mode forward (features=C branch) is covered.
    print("KERNEL_OK")
</pallas_src>

<mosaic_0001>
module attributes {stable_mosaic.version = 11 : i64} {
  func.func @_gin_kernel(%arg0: i32, %arg1: i32, %arg2: memref<8x128xf32, #tpu.memory_space<vmem>>, %arg3: memref<8x128xf32, #tpu.memory_space<vmem>>, %arg4: memref<8x128xf32, #tpu.memory_space<vmem>>, %arg5: memref<8x128xf32, #tpu.memory_space<vmem>>) attributes {dimension_semantics = [#tpu.dimension_semantics<parallel>, #tpu.dimension_semantics<parallel>], iteration_bounds = array<i64: 1, 1>, scalar_prefetch = 0 : i64, scratch_operands = 0 : i64, tpu.core_type = #tpu.core_type<tc>, window_params = [{transform_indices = @transform_0, window_bounds = array<i64: 8, 128>}, {transform_indices = @transform_1, window_bounds = array<i64: 8, 128>}, {transform_indices = @transform_2, window_bounds = array<i64: 8, 128>}, {transform_indices = @transform_3, window_bounds = array<i64: 8, 128>}]} {
    %c0 = arith.constant 0 : index
    %c0_0 = arith.constant 0 : index
    %0 = vector.load %arg2[%c0, %c0_0] : memref<8x128xf32, #tpu.memory_space<vmem>>, vector<8x128xf32>
    %c0_1 = arith.constant 0 : index
    %c0_2 = arith.constant 0 : index
    %1 = vector.load %arg3[%c0_1, %c0_2] : memref<8x128xf32, #tpu.memory_space<vmem>>, vector<8x128xf32>
    %2 = arith.mulf %0, %1 : vector<8x128xf32>
    %c0_3 = arith.constant 0 : index
    %c0_4 = arith.constant 0 : index
    %3 = vector.load %arg4[%c0_3, %c0_4] : memref<8x128xf32, #tpu.memory_space<vmem>>, vector<8x128xf32>
    %4 = arith.addf %2, %3 : vector<8x128xf32>
    %c0_5 = arith.constant 0 : index
    %c0_6 = arith.constant 0 : index
    %5 = vector.load %arg5[%c0_5, %c0_6] : memref<8x128xf32, #tpu.memory_space<vmem>>, vector<8x128xf32>
    tpu.vector_store %arg5[%c0_5, %c0_6], %4 {strides = array<i32>} : memref<8x128xf32, #tpu.memory_space<vmem>>, vector<8x128xf32>,
    return
  }
  func.func @transform_0(%arg0: i32, %arg1: i32) -> (i32, i32) {
    %c0_i32 = arith.constant 0 : i32
    return %arg0, %arg1 : i32, i32
  }
  func.func @transform_1(%arg0: i32, %arg1: i32) -> (i32, i32) {
    %c0_i32 = arith.constant 0 : i32
    %c0_i32_0 = arith.constant 0 : i32
    return %c0_i32, %arg1 : i32, i32
  }
  func.func @transform_2(%arg0: i32, %arg1: i32) -> (i32, i32) {
    %c0_i32 = arith.constant 0 : i32
    %c0_i32_0 = arith.constant 0 : i32
    return %c0_i32, %arg1 : i32, i32
  }
  func.func @transform_3(%arg0: i32, %arg1: i32) -> (i32, i32) {
    %c0_i32 = arith.constant 0 : i32
    return %arg0, %arg1 : i32, i32
  }
}

</mosaic_0001>

<bundles_post_ra>
// kernel: tpu_custom_call.1
= control target key start
LH: loop header
LB: loop body
LE: loop exit
PB: predicated region body
PF: predicated region fallthrough
CT: control target
= control target key end

     0   :  { %8 = vsyncpa [#allocation3], 0  ;;  %s222_s0 = inlined_call_operand.hbm [shape: f32[8,128], index: 0, kind: input, shape index: {}]   ;;  %s223_s1 = inlined_call_operand.hbm [shape: f32[8,128], index: 1, kind: input, shape index: {}]   ;;  %s224_s2 = inlined_call_operand.hbm [shape: f32[8,128], index: 2, kind: input, shape index: {}]   ;;  %s225_s3 = inlined_call_operand.hbm [shape: f32[8,128], index: 3, kind: output, shape index: {}]  }
   0x1   :  { %9 = vsyncpa [#allocation6], 0  ;;  %s27_s14 = sshll.u32 %s223_s1, 4  ;;  %s28_s14 = int_to_ptr.hbm [resolvable:$true] %s27_s14 }
   0x2   :  { %10 = vsyncpa [#allocation4], 0  ;;  %s186_s15 = smov [#allocation5]   ;;  %s16_s19 = sshll.u32 %s222_s0, 4  ;;  %s17_s19 = int_to_ptr.hbm [resolvable:$true] %s16_s19 }
   0x3   :  { %s29_s16 = sshll.u32 %s186_s15, 4  ;;  %s187_s20 = smov [#allocation2]   ;;  %s30_s16 = int_to_ptr.vmem [resolvable:$true] %s29_s16 }
   0x4   :  { %32 = dma.hbm_to_vmem [thread:$0]  %s28_s14, 128, %s30_s16, [#allocation6]  }
   0x5   :  { %s18_s21 = sshll.u32 %s187_s20, 4  ;;  %s38_s24 = sshll.u32 %s224_s2, 4  ;;  %s19_s21 = int_to_ptr.vmem [resolvable:$true] %s18_s21  ;;  %s39_s24 = int_to_ptr.hbm [resolvable:$true] %s38_s24 }
   0x6   :  { %21 = dma.hbm_to_vmem [thread:$0]  %s17_s19, 128, %s19_s21, [#allocation3]  }
   0x7   :  { %s188_s1 = smov [#allocation7]  }
   0x8   :  { %s40_s25 = sshll.u32 %s188_s1, 4  ;;  %s41_s25 = int_to_ptr.vmem [resolvable:$true] %s40_s25 }
   0x9   :  { %43 = dma.hbm_to_vmem [thread:$0]  %s39_s24, 128, %s41_s25, [#allocation6]  }
   0xa   :  { %180 = dma.done.wait [#allocation3], 128  }
   0xb   :  { %181 = vsyncadd [#allocation3], 4294967168 }
   0xc   :  { %182 = dma.done.wait [#allocation6], 256  }
   0xd   :  { %183 = vsyncadd [#allocation6], 4294967040  ;;  %v56_v0 = vld [vmem:[#allocation2] sm:$0xff]  ;;  %v57_v1 = vld [vmem:[#allocation5] sm:$0xff]  ;;  %s189_s0 = smov [#allocation8]   ;;  %s69_s2 = sshll.u32 %s225_s3, 4  ;;  %s70_s2 = int_to_ptr.hbm [resolvable:$true] %s69_s2 }
   0xe   :  { %v59_v2 = vld [vmem:[#allocation7] sm:$0xff]  ;;  %s67_s26 = sshll.u32 %s189_s0, 4  ;;  %v58_v3 = vmul.f32 %v57_v1, %v56_v0  ;;  %s68_s26 = int_to_ptr.vmem [resolvable:$true] %s67_s26 }
  0x10   :  { %v60_v4 = vadd.f32 %v59_v2, %v58_v3 }
  0x12   :  { %61 = vst [vmem:[#allocation8] sm:$0xff] %v60_v4 }
  0x13   :  { %72 = dma.vmem_to_hbm [thread:$0]  %s68_s26, 128, %s70_s2, [#allocation4]  }
  0x14   :  { %184 = dma.done.wait [#allocation4], 128  }
  0x15   :  { %185 = vsyncadd [#allocation4], 4294967168 }
  0x16   :  { %77 = vsyncpa [#allocation3], 1 }
  0x17   :  { %78 = vsyncpa [#allocation6], 1 }
  0x18   :  { %79 = vsyncpa [#allocation4], 1 }

</bundles_post_ra>
